<compile_context>
chip_gen: v7x
topology: tpu7x:2x2x1
jax: 0.10.0
libtpu: 0.0.40
codegen_flags: <defaults>
</compile_context>

<pallas_src>
import jax
import jax.numpy as jnp
from jax.experimental import pallas as pl
from jax.experimental.pallas import tpu as pltpu


def se_kernel(x_ref, w1_ref, b1_ref, w2_ref, b2_ref, o_ref):
    # x_ref / o_ref: (Nb, C, HW)   w1_ref: (C, Ch)  b1_ref: (1, Ch)
    # w2_ref: (Ch, C)              b2_ref: (1, C)
    hw = x_ref.shape[-1]

    # ---- global average pool over the spatial (lane) axis ----
    pooled = jnp.sum(x_ref[...], axis=-1) * (1.0 / hw)          # (Nb, C), f32

    # ---- 1x1 conv (C -> C/4) + ReLU6 ----
    h = jnp.dot(pooled, w1_ref[...],
                preferred_element_type=jnp.float32) + b1_ref[...]
    h = jnp.clip(h, 0.0, 6.0)                                    # (Nb, Ch)

    # ---- 1x1 conv (C/4 -> C) + Hardswish ----
    s = jnp.dot(h, w2_ref[...],
                preferred_element_type=jnp.float32) + b2_ref[...]
    s = s * jnp.clip(s + 3.0, 0.0, 6.0) * (1.0 / 6.0)            # (Nb, C)

    # ---- scale the input ----
    # Re-read x from VMEM here (cheap, 3 vld/cycle) instead of keeping the
    # whole (Nb, C, HW) tile live in vregs across the matmul phase.
    o_ref[...] = (x_ref[...] * s[:, :, None]).astype(o_ref.dtype)


def _pick_batch_block(n, c, hw, itemsize, budget_bytes=3 << 20):
    """Largest divisor of N whose (Nb, C, HW) block fits the VMEM budget.

    Budget is conservative (~3 MiB/block => ~12 MiB with in+out double
    buffering), safe under the default scoped-VMEM limit on v5e/v6e/v7x.
    When N >= 2 keep at least 2 grid steps so both v7x TensorCores get work.
    """
    per_image = max(1, c * hw * itemsize)
    nb_cap = max(1, budget_bytes // per_image)
    if n >= 2:
        nb_cap = min(nb_cap, max(1, n // 2))
    nb_cap = min(nb_cap, n)
    for nb in range(nb_cap, 0, -1):
        if n % nb == 0:
            return nb
    return 1


def se_module_pallas(x_nchw, w1, b1, w2, b2):
    """x_nchw: (N, C, H, W) float32. Returns (N, C, H, W)."""
    N, C, H, W = x_nchw.shape
    HW = H * W
    Ch = w1.shape[1]

    # Free reshape: NCHW memory layout is preserved, HW becomes the lane dim.
    x_flat = x_nchw.reshape(N, C, HW)
    b1_2d = b1.reshape(1, Ch)
    b2_2d = b2.reshape(1, C)

    nb = _pick_batch_block(N, C, HW, x_flat.dtype.itemsize)
    grid = (N // nb,)

    itemsize = x_flat.dtype.itemsize
    cost = pl.CostEstimate(
        flops=2 * N * (C * Ch + Ch * C) + 3 * N * C * HW,
        transcendentals=0,
        bytes_accessed=2 * N * C * HW * itemsize
        + (C * Ch + Ch * C + Ch + C) * 4,
    )

    out = pl.pallas_call(
        se_kernel,
        out_shape=jax.ShapeDtypeStruct((N, C, HW), x_flat.dtype),
        grid_spec=pltpu.PrefetchScalarGridSpec(
            num_scalar_prefetch=0,
            grid=grid,
            in_specs=[
                pl.BlockSpec((nb, C, HW), lambda n: (n, 0, 0)),
                pl.BlockSpec((C, Ch), lambda n: (0, 0)),
                pl.BlockSpec((1, Ch), lambda n: (0, 0)),
                pl.BlockSpec((Ch, C), lambda n: (0, 0)),
                pl.BlockSpec((1, C), lambda n: (0, 0)),
            ],
            out_specs=pl.BlockSpec((nb, C, HW), lambda n: (n, 0, 0)),
        ),
        compiler_params=pltpu.CompilerParams(
            dimension_semantics=("parallel",)),
        cost_estimate=cost,
        # TODO(synk): for N == 1 on v7x a two-pass HW-split (pool pass + scale
        # pass) would be needed to occupy both TensorCores.
    )(x_flat, w1, b1_2d, w2, b2_2d)

    return out.reshape(N, C, H, W)


def se_module_ref(x_nchw, w1, b1, w2, b2):
    """Pure-JAX reference mirroring the PyTorch module (NCHW)."""
    pooled = jnp.mean(x_nchw, axis=(2, 3))                       # (N, C)
    h = jnp.clip(pooled @ w1 + b1, 0.0, 6.0)                     # (N, Ch)
    s = h @ w2 + b2                                              # (N, C)
    s = s * jnp.clip(s + 3.0, 0.0, 6.0) / 6.0                    # hardswish
    return x_nchw * s[:, :, None, None]


if __name__ == "__main__":
    N, C, H, W = 2, 4, 16, 16
    Ch = C // 4  # hidden_channel = inchannels / 4

    key = jax.random.PRNGKey(0)
    kx, kw1, kb1, kw2, kb2 = jax.random.split(key, 5)

    x = jax.random.normal(kx, (N, C, H, W), dtype=jnp.float32)

    # Conv2d(C, Ch, 1) weight (Ch, C, 1, 1) -> stored as (C, Ch) for right-matmul.
    w1 = jax.random.normal(kw1, (C, Ch), dtype=jnp.float32) * 0.5
    b1 = jax.random.normal(kb1, (Ch,), dtype=jnp.float32) * 0.1
    # Conv2d(Ch, C, 1) weight (C, Ch, 1, 1) -> stored as (Ch, C).
    w2 = jax.random.normal(kw2, (Ch, C), dtype=jnp.float32) * 0.5
    b2 = jax.random.normal(kb2, (C,), dtype=jnp.float32) * 0.1

    out = se_module_pallas(x, w1, b1, w2, b2)
    out = jax.block_until_ready(out)

    ref = se_module_ref(x, w1, b1, w2, b2)
    assert out.shape == (N, C, H, W)
    assert jnp.allclose(out, ref, atol=1e-5, rtol=1e-5), "mismatch vs reference"

    print("KERNEL_OK")
</pallas_src>

<mosaic_0001>
module attributes {stable_mosaic.version = 11 : i64} {
  func.func @se_kernel(%arg0: i32, %arg1: memref<1x4x256xf32, #tpu.memory_space<vmem>>, %arg2: memref<4x1xf32, #tpu.memory_space<vmem>>, %arg3: memref<1x1xf32, #tpu.memory_space<vmem>>, %arg4: memref<1x4xf32, #tpu.memory_space<vmem>>, %arg5: memref<1x4xf32, #tpu.memory_space<vmem>>, %arg6: memref<1x4x256xf32, #tpu.memory_space<vmem>>) attributes {dimension_semantics = [#tpu.dimension_semantics<parallel>], iteration_bounds = array<i64: 2>, scalar_prefetch = 0 : i64, scratch_operands = 0 : i64, tpu.core_type = #tpu.core_type<tc>, window_params = [{transform_indices = @transform_0, window_bounds = array<i64: 1, 4, 256>}, {pipeline_mode = #tpu.pipeline_mode<synchronous>, transform_indices = @transform_1, window_bounds = array<i64: 4, 1>}, {pipeline_mode = #tpu.pipeline_mode<synchronous>, transform_indices = @transform_2, window_bounds = array<i64: 1, 1>}, {pipeline_mode = #tpu.pipeline_mode<synchronous>, transform_indices = @transform_3, window_bounds = array<i64: 1, 4>}, {pipeline_mode = #tpu.pipeline_mode<synchronous>, transform_indices = @transform_4, window_bounds = array<i64: 1, 4>}, {transform_indices = @transform_5, window_bounds = array<i64: 1, 4, 256>}]} {
    %c0 = arith.constant 0 : index
    %c0_0 = arith.constant 0 : index
    %c0_1 = arith.constant 0 : index
    %0 = vector.load %arg1[%c0, %c0_0, %c0_1] : memref<1x4x256xf32, #tpu.memory_space<vmem>>, vector<1x4x256xf32>
    %cst = arith.constant dense<0.000000e+00> : vector<1x4xf32>
    %1 = vector.multi_reduction <add>, %0, %cst [2] : vector<1x4x256xf32> to vector<1x4xf32>
    %cst_2 = arith.constant 3.906250e-03 : f32
    %2 = vector.broadcast %cst_2 : f32 to vector<1x4xf32>
    %3 = arith.mulf %1, %2 : vector<1x4xf32>
    %c0_3 = arith.constant 0 : index
    %c0_4 = arith.constant 0 : index
    %4 = vector.load %arg2[%c0_3, %c0_4] : memref<4x1xf32, #tpu.memory_space<vmem>>, vector<4x1xf32>
    %cst_5 = arith.constant dense<0.000000e+00> : vector<1x1xf32>
    %5 = tpu.matmul %3, %4, %cst_5 {dimension_numbers = #tpu.dot_dimension_numbers<[1], [0], [0], [1], [0, 0, 1, 1], [], []>} : vector<1x4xf32>, vector<4x1xf32>, vector<1x1xf32> -> vector<1x1xf32>
    %c0_6 = arith.constant 0 : index
    %c0_7 = arith.constant 0 : index
    %6 = vector.load %arg3[%c0_6, %c0_7] : memref<1x1xf32, #tpu.memory_space<vmem>>, vector<1x1xf32>
    %7 = arith.addf %5, %6 : vector<1x1xf32>
    %cst_8 = arith.constant 0.000000e+00 : f32
    %cst_9 = arith.constant 6.000000e+00 : f32
    %8 = vector.broadcast %cst_8 : f32 to vector<1x1xf32>
    %9 = arith.maximumf %8, %7 : vector<1x1xf32>
    %10 = vector.broadcast %cst_9 : f32 to vector<1x1xf32>
    %11 = arith.minimumf %10, %9 : vector<1x1xf32>
    %c0_10 = arith.constant 0 : index
    %c0_11 = arith.constant 0 : index
    %12 = vector.load %arg4[%c0_10, %c0_11] : memref<1x4xf32, #tpu.memory_space<vmem>>, vector<1x4xf32>
    %cst_12 = arith.constant dense<0.000000e+00> : vector<1x4xf32>
    %13 = tpu.matmul %11, %12, %cst_12 {dimension_numbers = #tpu.dot_dimension_numbers<[1], [0], [0], [1], [0, 0, 1, 1], [], []>} : vector<1x1xf32>, vector<1x4xf32>, vector<1x4xf32> -> vector<1x4xf32>
    %c0_13 = arith.constant 0 : index
    %c0_14 = arith.constant 0 : index
    %14 = vector.load %arg5[%c0_13, %c0_14] : memref<1x4xf32, #tpu.memory_space<vmem>>, vector<1x4xf32>
    %15 = arith.addf %13, %14 : vector<1x4xf32>
    %cst_15 = arith.constant 3.000000e+00 : f32
    %16 = vector.broadcast %cst_15 : f32 to vector<1x4xf32>
    %17 = arith.addf %15, %16 : vector<1x4xf32>
    %cst_16 = arith.constant 0.000000e+00 : f32
    %cst_17 = arith.constant 6.000000e+00 : f32
    %18 = vector.broadcast %cst_16 : f32 to vector<1x4xf32>
    %19 = arith.maximumf %18, %17 : vector<1x4xf32>
    %20 = vector.broadcast %cst_17 : f32 to vector<1x4xf32>
    %21 = arith.minimumf %20, %19 : vector<1x4xf32>
    %22 = arith.mulf %15, %21 : vector<1x4xf32>
    %cst_18 = arith.constant 0.166666672 : f32
    %23 = vector.broadcast %cst_18 : f32 to vector<1x4xf32>
    %24 = arith.mulf %22, %23 : vector<1x4xf32>
    %c0_19 = arith.constant 0 : index
    %c0_20 = arith.constant 0 : index
    %c0_21 = arith.constant 0 : index
    %25 = vector.load %arg1[%c0_19, %c0_20, %c0_21] : memref<1x4x256xf32, #tpu.memory_space<vmem>>, vector<1x4x256xf32>
    %26 = vector.shape_cast %24 : vector<1x4xf32> to vector<1x4x1xf32>
    %27 = vector.broadcast %26 : vector<1x4x1xf32> to vector<1x4x256xf32>
    %28 = arith.mulf %25, %27 : vector<1x4x256xf32>
    %c0_22 = arith.constant 0 : index
    %c0_23 = arith.constant 0 : index
    %c0_24 = arith.constant 0 : index
    %29 = vector.load %arg6[%c0_22, %c0_23, %c0_24] : memref<1x4x256xf32, #tpu.memory_space<vmem>>, vector<1x4x256xf32>
    tpu.vector_store %arg6[%c0_22, %c0_23, %c0_24], %28 {strides = array<i32>} : memref<1x4x256xf32, #tpu.memory_space<vmem>>, vector<1x4x256xf32>,
    return
  }
  func.func @transform_0(%arg0: i32) -> (i32, i32, i32) {
    %c0_i32 = arith.constant 0 : i32
    %c0_i32_0 = arith.constant 0 : i32
    %c0_i32_1 = arith.constant 0 : i32
    return %arg0, %c0_i32, %c0_i32_0 : i32, i32, i32
  }
  func.func @transform_1(%arg0: i32) -> (i32, i32) {
    %c0_i32 = arith.constant 0 : i32
    %c0_i32_0 = arith.constant 0 : i32
    %c0_i32_1 = arith.constant 0 : i32
    return %c0_i32, %c0_i32_0 : i32, i32
  }
  func.func @transform_2(%arg0: i32) -> (i32, i32) {
    %c0_i32 = arith.constant 0 : i32
    %c0_i32_0 = arith.constant 0 : i32
    %c0_i32_1 = arith.constant 0 : i32
    return %c0_i32, %c0_i32_0 : i32, i32
  }
  func.func @transform_3(%arg0: i32) -> (i32, i32) {
    %c0_i32 = arith.constant 0 : i32
    %c0_i32_0 = arith.constant 0 : i32
    %c0_i32_1 = arith.constant 0 : i32
    return %c0_i32, %c0_i32_0 : i32, i32
  }
  func.func @transform_4(%arg0: i32) -> (i32, i32) {
    %c0_i32 = arith.constant 0 : i32
    %c0_i32_0 = arith.constant 0 : i32
    %c0_i32_1 = arith.constant 0 : i32
    return %c0_i32, %c0_i32_0 : i32, i32
  }
  func.func @transform_5(%arg0: i32) -> (i32, i32, i32) {
    %c0_i32 = arith.constant 0 : i32
    %c0_i32_0 = arith.constant 0 : i32
    %c0_i32_1 = arith.constant 0 : i32
    return %arg0, %c0_i32, %c0_i32_0 : i32, i32, i32
  }
}

</mosaic_0001>

<bundles_post_ra>
// kernel: tpu_custom_call.1
= control target key start
LH: loop header
LB: loop body
LE: loop exit
PB: predicated region body
PF: predicated region fallthrough
CT: control target
= control target key end

     0   :  { %s923_s0 = inlined_call_operand.hbm [shape: f32[2,4,256], index: 0, kind: input, shape index: {}]   ;;  %s924_s1 = inlined_call_operand.vmem [shape: f32[4,1], index: 1, kind: input, shape index: {}]   ;;  %s925_s2 = inlined_call_operand.<no memory space> [shape: f32[1,1], index: 2, kind: input, shape index: {}]   ;;  %s926_s3 = inlined_call_operand.vmem [shape: f32[1,4], index: 3, kind: input, shape index: {}]   ;;  %s927_s4 = inlined_call_operand.vmem [shape: f32[1,4], index: 4, kind: input, shape index: {}]   ;;  %s928_s5 = inlined_call_operand.hbm [shape: f32[2,4,256], index: 5, kind: output, shape index: {}]  }
   0x1   :  { %v10_v0 = vstv %s925_s2 }
   0x2   :  { %11 = vst [vmem:[#allocation2] sm:$0x1] %v10_v0 }
   0x3   :  { %12 = vsyncpa [#allocation4], 0 }
   0x4   :  { %14 = vsyncpa [#allocation4 + $0x1], 0 }
   0x5   :  { %15 = vsyncpa [#allocation5], 0 }
   0x6   :  { %17 = vsyncpa [#allocation5 + $0x1], 0  ;;  %s749_s20 = smov 0   ;;  %s751_s21 = smov 0  }
   0x7   :  { %s753_s22 = smov 0   ;;  %s755_s23 = smov 0  }
   0x8 LB: > { %s770_s2 = sadd.s32 4294967295, %s709_s23   ;;  %s529_s24 = sadd.s32 4294967294, %s709_s23   ;;  %s709_s23 = sphi %s755_s23, %s943_s23   ;;  %s705_s22 = sphi %s753_s22, %s942_s22   ;;  %s701_s21 = sphi %s751_s21, %s941_s21   ;;  %s697_s20 = sphi %s749_s20, %s940_s20  }
   0x9   : > { %s774_s25 = sadd.s32 1, %s709_s23   ;;  %s30_s26 = sadd.s32 1, %s705_s22 }
   0xa   : > { %s27_s27 = ssub.s32 %s709_s23, %s774_s25  ;;  %p37_p0 = scmp.ne.s32.totalorder %s705_s22, %s701_s21 }
   0xb   : > { %p28_p1 = scmp.eq.s32.totalorder %s27_s27, 0  ;;  %p38_p2 = scmp.eq.s32.totalorder %s709_s23, 0 }
   0xc   : > { %p43_p3 = scmp.ne.s32.totalorder %s701_s21, %s697_s20  ;;  %p44_p4 = scmp.eq.s32.totalorder %s770_s2, 0 }
   0xd   : > { %s786_s28 = scalar_select %p28_p1, %s705_s22, %s30_s26  }
   0xe   : > { %p788_p5 = por %p38_p2, %p37_p0  ;;  %p792_p6 = por %p44_p4, %p43_p3 }
   0xf   : > { %p151_p7 = scmp.eq.s32.totalorder %s770_s2, 1  ;;  %p157_p8 = scmp.eq.s32.totalorder %s529_s24, 1 }
  0x10   : > { %p575_p10 = scmp.lt.s32.totalorder %s709_s23, 2  ;;  %s189_s8 = sand.u32 1, %s705_s22  }
  0x11   : > { %p799_p11 = por %p151_p7, %p37_p0  ;;  %p803_p12 = por %p157_p8, %p43_p3 }
  0x12   : > { %s547_s9 = sshll.u32 %s709_s23, 7  ;;  %s532_s10 = sshll.u32 %s189_s8, 3 }
  0x13   : > { %s932_s6 = scalar_select %p799_p11, 1, 0 }
  0x14   : > { %s933_s7 = scalar_select %p803_p12, 1, 0 }
  0x15   : > { %s812_s13 = scalar_lea.hbm %s923_s0, %s547_s9  ;;  %s193_s14 = scalar_lea.vmem [#allocation3], %s532_s10 }
  0x16   : > { %s201_s15 = sshll.u32 %s193_s14, 4  ;;  %p816_p13 = pnand %p575_p10, %p788_p5  ;;  %s820_s15 = int_to_ptr.vmem [resolvable:$true] %s201_s15 }
  0x17   : > { %s190_s17 = scalar_lea.sflag [#allocation4], %s189_s8  ;;  %s613_s18 = scalar_lea.hbm %s812_s13, 128 }
  0x18   : > { %p614_p2 = scmp.ne.s32.totalorder %s812_s13, %s613_s18  ;;  %p615_p3 = pneg %p816_p13 }
  0x19   : > { %s618_s26 = scalar_lea.hbm %s923_s0, 256  ;;  %p619_p5 = scmp.lt.u32.totalorder %s812_s13, %s923_s0 }
  0x1a   : > { %p616_p4 = pnand %p615_p3, %p614_p2  ;;  %p620_p8 = scmp.lt.u32.totalorder %s618_s26, %s613_s18 }
  0x1b   : > { %p622_p9 = scmp.lt.u32.totalorder %s613_s18, %s812_s13 }
  0x1c   : > { %p617_p7 = pneg %p616_p4  ;;  %p621_p10 = por %p620_p8, %p619_p5 }
  0x1e   : > { %p623_p0 = por %p622_p9, %p621_p10 }
  0x20   : > { %p624_p1 = pnand %p623_p0, %p617_p7 }
  0x22   : > { %627 = shalt.err (!%p624_p1)
}
  0x23   : > { %s628_s8 = scalar_lea.vmem %s820_s15, 128  ;;  %s711_s9 = smov [#allocation3]  }
  0x24   : > { %p629_p2 = scmp.ne.s32.totalorder %s820_s15, %s628_s8  ;;  %s633_s10 = sshll.u32 %s711_s9, 4  ;;  %s634_s10 = int_to_ptr.vmem [resolvable:$false] %s633_s10 }
  0x25   : > { %s635_s11 = scalar_lea.vmem %s634_s10, 256  ;;  %p636_p11 = scmp.lt.s32.totalorder %s820_s15, %s634_s10 }
  0x26   : > { %p631_p4 = pnand %p629_p2, %p615_p3  ;;  %p637_p5 = scmp.lt.s32.totalorder %s635_s11, %s628_s8 }
  0x28   : > { %p632_p12 = pneg %p631_p4  ;;  %p638_p8 = por %p637_p5, %p636_p11 }
  0x2a   : > { %p639_p9 = pnand %p638_p8, %p632_p12 }
  0x2c   : > { %642 = shalt.err (!%p639_p9)
}
  0x2d   : > { %570 = dma.hbm_to_vmem [thread:$0]  (!%p816_p13), %s812_s13, 128, %s820_s15, %s190_s17  }
  0x2e   : > { %p935_p0 = scmp.lt.s32.totalorder %s709_s23, 3  ;;  %p936_p1 = scmp.ge.s32.totalorder %s709_s23, 1 }
  0x30   : > { %p207_p3 = pnand %p936_p1, %p935_p0 }
  0x31   : > { %s854_s12 = sand.u32 (!%p207_p3), 1, %s701_s21  }
  0x32   : > { %210 = sbr.rel (%p207_p3) target bundleno = 787 (0x313), region = 40  ;;  %s536_s14 = sshll.u32 (!%p207_p3), %s854_s12, 3 }
  0x33   : > { %s213_s18 = scalar_lea.sflag (!%p207_p3), [#allocation4], %s854_s12  ;;  %s216_s16 = scalar_lea.vmem (!%p207_p3), [#allocation3], %s536_s14 }
  0x39   : > { %688 = dma.done.wait (%p792_p6), %s213_s18, 128  }
  0x3a   : > { %690 = vsyncadd (%p792_p6), %s213_s18, 4294967168  ;;  %vm247_vm0 = vcmask 1043456   ;;  %v243_v1 = vld [vmem:[%s216_s16] sm:$0xff]  ;;  %v712_v6 = vmov 0.0   ;;  %vm713_vm1 = vmmov 0   ;;  %v257_v8 = vlaneseq  ;;  %s548_s26 = sshll.u32 %s770_s2, 7 }
  0x3b   : > { %v245_v2 = vcombine.high %v243_v1, %v243_v1  ;;  %v248_v3 = vsel %vm247_vm0, %v243_v1, 0.0  ;;  %553 = vmatprep.subr.mxu0 %v712_v6  ;;  %v254_v7 = vld [vmem:[%s924_s1] sm:$0xf]  ;;  %558 = vmatprep.subr.mxu1 %v712_v6  ;;  %vm263_vm2 = vcmask 31744   ;;  %vm347_vm3 = vcmask 1040384   ;;  %s242_s27 = scalar_lea.vmem [#allocation6], %s536_s14  ;;  %s879_s10 = scalar_lea.hbm %s928_s5, %s548_s26 }
  0x3c   : > { %554 = vmatpush3.msk.msra.mxu0 %vm247_vm0, %v254_v7  ;;  %555 = vmatprep.mubr.msk.f32.mxu0 %vm713_vm1, %v712_v6  ;;  %v258_v9 = vand.u32 127, %v257_v8  ;;  %v260_v10 = vshrl.u32 %v257_v8, 7  ;;  %v341_v15 = vld [vmem:[%s926_s3] sm:$0x1]  ;;  %vm343_vm4 = vcmask 7168   ;;  %s459_s29 = sshll.u32 %s242_s27, 4  ;;  %s881_s29 = int_to_ptr.vmem [resolvable:$true] %s459_s29 }
  0x3d   : > { %v249_v4 = vsel %vm247_vm0, %v245_v2, 0.0  ;;  %560 = vmatprep.mubr.msk.f32.mxu1 %vm713_vm1, %v712_v6  ;;  %559 = vmatpush3.msk.msra.mxu1 %vm347_vm3, %v341_v15  ;;  %v255_v16 = vld [vmem:[#allocation2] sm:$0x1]  ;;  %v714_v33 = vmov 839922192   ;;  %s445_s11 = scalar_lea.sflag [#allocation5], %s854_s12 }
  0x3e   : > { %v250_v5 = vadd.f32 %v249_v4, %v248_v3  ;;  %v261_v11 = vsub.s32 %v258_v9, %v260_v10  ;;  %v342_v22 = vld [vmem:[%s927_s4] sm:$0x1]  ;;  %v428_v30 = vsub.s32 0, %v260_v10  ;;  %v435_v34 = vunpack.c.l.s4 %v714_v33  ;;  %s643_s18 = scalar_lea.vmem %s881_s29, 128  ;;  %p937_p11 = scmp.ne.s32.totalorder %s932_s6, 0 }
  0x3f   : > { %p644_p6 = scmp.ne.s32.totalorder %s881_s29, %s643_s18  ;;  %s715_s2 = smov [#allocation6]  }
  0x40   : > { %251 = vadd.xlane.f32.xlu0 %v250_v5  ;;  %v436_v35 = vunpack.c.0.s8 %v435_v34  ;;  %s647_s14 = sshll.u32 %s715_s2, 4  ;;  %s648_s14 = int_to_ptr.vmem [resolvable:$false] %s647_s14 }
  0x41   : > { %p645_p12 = pnand %p644_p6, %p937_p11  ;;  %s649_s16 = scalar_lea.vmem %s648_s14, 256 }
  0x42   : > { %v439_v36 = vsub.s32 %v436_v35, %v260_v10  ;;  %p650_p7 = scmp.lt.s32.totalorder %s881_s29, %s648_s14  ;;  %p651_p10 = scmp.lt.s32.totalorder %s649_s16, %s643_s18 }
  0x43   : > { %p646_p13 = pneg %p645_p12 }
  0x44   : > { %p652_p2 = por %p651_p10, %p650_p7 }
  0x46   : > { %p653_p4 = pnand %p652_p2, %p646_p13 }
  0xcd   : > { %v252_v12 = vpop.xlane.xlu0 %251 }
  0xce   : > { %v253_v13 = vmul.f32 0.00390625, %v252_v12 }
  0xd0   : > { %v262_v14 = vrot.slane %v253_v13, %v261_v11 }
  0xd2   : > { %556 = vmatmul.mubr.msk.f32.vlgmr.msra.gmra.mrb[0].mxu0 %vm263_vm2, %v262_v14 }
 0x1a5   : > { %v335_v17 = vpop.f32.mrb[0].mxu0 }
 0x1a6   : > { %v336_v18 = vadd.f32 %v335_v17, %v255_v16  ;;  %v557_v19 = vpop.f32.mrb[1].mxu0 }
 0x1a8   : > { %v339_v20 = vmax.f32 %v336_v18, 0.0 }
 0x1aa   : > { %v340_v21 = vmin.f32 %v339_v20, 6.0 }
 0x1ac   : > { %561 = vmatmul.mubr.msk.f32.vlgmr.msra.gmra.mrb[0].mxu1 %vm343_vm4, %v340_v21 }
 0x27f   : > { %v417_v23 = vpop.f32.mrb[0].mxu1 }
 0x280   : > { %v418_v24 = vadd.f32 %v417_v23, %v342_v22  ;;  %v562_v25 = vpop.f32.mrb[1].mxu1 }
 0x282   : > { %v421_v26 = vadd.f32 3.0, %v418_v24 }
 0x284   : > { %v422_v27 = vmax.f32 %v421_v26, 0.0 }
 0x286   : > { %v423_v28 = vmin.f32 %v422_v27, 6.0 }
 0x288   : > { %v424_v29 = vmul.f32 %v423_v28, %v418_v24 }
 0x28a   : > { %v425_v31 = vmul.f32 0.16666667, %v424_v29 }
 0x28c   : > { %v429_v32 = vrot.slane %v425_v31, %v428_v30 }
 0x28e   : > { %431 = vbcast.lane.b32.xlu0 %v429_v32, 256 }
 0x300   : > { %v432_v37 = vpop.permute.xlu0 %431 }
 0x301   : > { %v440_v38 = vrot.slane %v432_v37, %v439_v36 }
 0x303   : > { %v442_v39 = vmul.f32 %v440_v38, %v243_v1 }
 0x305   : > { %443 = vst [vmem:[%s242_s27] sm:$0xff] %v442_v39 }
 0x306   : > { %656 = shalt.err (!%p653_p4)
}
 0x307   : > { %s657_s12 = scalar_lea.hbm %s879_s10, 128  ;;  %s661_s30 = scalar_lea.hbm %s928_s5, 256 }
 0x308   : > { %p658_p5 = scmp.ne.s32.totalorder %s879_s10, %s657_s12  ;;  %p662_p0 = scmp.lt.u32.totalorder %s879_s10, %s928_s5 }
 0x309   : > { %p663_p1 = scmp.lt.u32.totalorder %s661_s30, %s657_s12  ;;  %p665_p6 = scmp.lt.u32.totalorder %s657_s12, %s879_s10 }
 0x30a   : > { %p659_p8 = pnand %p658_p5, %p937_p11 }
 0x30b   : > { %p664_p3 = por %p663_p1, %p662_p0 }
 0x30c   : > { %p660_p9 = pneg %p659_p8 }
 0x30d   : > { %p666_p12 = por %p665_p6, %p664_p3 }
 0x30f   : > { %p667_p13 = pnand %p666_p12, %p660_p9 }
 0x311   : > { %670 = shalt.err (!%p667_p13)
}
 0x312   : > { %565 = dma.vmem_to_hbm [thread:$0]  (%p937_p11), %s881_s29, 128, %s879_s10, %s445_s11  }
 0x313 PF: > { %s471_s24 = sand.u32 1, %s697_s20   ;;  %p938_p7 = scmp.ne.s32.totalorder %s933_s7, 0 }
 0x314   : > { %p939_p10 = scmp.ge.s32.totalorder %s709_s23, 2  ;;  %s472_s26 = scalar_lea.sflag [#allocation5], %s471_s24 }
 0x316   : > { %p572_p2 = pnand %p939_p10, %p938_p7 }
 0x318   : > { %692 = dma.done.wait (!%p572_p2), %s472_s26, 128  }
 0x319   : > { %694 = vsyncadd (!%p572_p2), %s472_s26, 4294967168  ;;  %p20_p4 = scmp.ge.s32.totalorder %s774_s25, 4   ;;  %s940_s20 = smov %s701_s21 }
 0x31a   : > { %s941_s21 = smov %s705_s22  ;;  %s942_s22 = smov %s786_s28 }
 0x31b   : > { %s943_s23 = smov %s774_s25  ;;  %22 = sbr.rel (!%p20_p4) target bundleno = 8 (0x8), region = 85 }
 0x322   :  { %477 = vsyncpa [#allocation4], 1 }
 0x323   :  { %479 = vsyncpa [#allocation4 + $0x1], 1 }
 0x324   :  { %480 = vsyncpa [#allocation5], 1 }
 0x325   :  { %482 = vsyncpa [#allocation5 + $0x1], 1 }

</bundles_post_ra>
